<compile_context>
chip_gen: v6e
topology: v6e:2x2x1
jax: 0.10.0
libtpu: 0.0.40
codegen_flags: <defaults>
</compile_context>

<pallas_src>
import functools

import jax
import jax.numpy as jnp
from jax.experimental import pallas as pl
from jax.experimental.pallas import tpu as pltpu


# ---------------------------------------------------------------------------
# Pallas kernel: fused 3-D conv (implicit taps) + bias + PixelNorm + LeakyReLU
# ---------------------------------------------------------------------------
def _disconv_kernel(*refs, k, stride, Ho, Wo, inv_cout):
    # refs layout (num_scalar_prefetch == 0):
    #   refs[0:k]   : k depth-plane refs, each (Hp, Wp, Cin)  bf16
    #   refs[k]     : weight (k*k*k, Cin, Cout)               bf16 (resident)
    #   refs[k+1]   : bias   (1, Cout)                        f32  (resident)
    #   refs[k+2]   : output (Ho, Wo, Cout)                   f32
    x_refs = refs[:k]
    w_ref = refs[k]
    b_ref = refs[k + 1]
    o_ref = refs[k + 2]
    cout = o_ref.shape[-1]

    bias = b_ref[...]                                   # (1, Cout) f32

    def row_body(oh, carry):
        acc = jnp.zeros((Wo, cout), jnp.float32)
        for dz in range(k):                             # depth taps (resident planes)
            for dy in range(k):                         # in-plane row taps
                row = x_refs[dz][oh * stride + dy]      # (Wp, Cin) bf16
                for dx in range(k):                     # in-plane column taps
                    lhs = row[dx:dx + Wo, :]            # (Wo, Cin) static slice
                    w_t = w_ref[(dz * k + dy) * k + dx]  # (Cin, Cout)
                    acc = acc + jnp.dot(lhs, w_t,
                                        preferred_element_type=jnp.float32)
        acc = acc + bias
        # PixelNorm over channels.  Cout is NOT lane padded (the block spans
        # the full channel extent), so sum * (1/Cout) is the true mean.
        ms = jnp.sum(acc * acc, axis=-1, keepdims=True) * inv_cout
        y = acc * jax.lax.rsqrt(ms + 1e-8)
        # LeakyReLU(0.2) == max(y, 0.2*y)
        o_ref[oh] = jnp.maximum(y, 0.2 * y).astype(o_ref.dtype)
        return carry

    jax.lax.fori_loop(0, Ho, row_body, 0)


def _round_up(a, b):
    return (a + b - 1) // b * b


def _vmem_block_bytes(shape, itemsize):
    """Conservative VMEM footprint of one block (last two dims tile padded)."""
    shape = tuple(shape)
    if len(shape) < 2:
        shape = (1,) + shape
    lead = 1
    for d in shape[:-2]:
        lead *= d
    return lead * _round_up(shape[-2], 16) * _round_up(shape[-1], 128) * itemsize


# ---------------------------------------------------------------------------
# Wrapper: channels-last prep + pallas_call
# ---------------------------------------------------------------------------
@functools.partial(jax.jit,
                   static_argnames=("kernel_size", "stride", "padding"))
def disconv_forward(x, weight, bias, *, kernel_size=3, stride=1, padding=1):
    """Forward pass of disConv.

    x:      (N, Cin, D, H, W)  float32   (NCDHW, same as PyTorch)
    weight: (Cout, Cin, kd, kh, kw)      (same as PyTorch Conv3d.weight)
    bias:   (Cout,)
    returns (N, Cout, Do, Ho, Wo) float32
    """
    N, Cin, D, H, W = x.shape
    Cout = weight.shape[0]
    k, s, p = kernel_size, stride, padding
    if s != 1:
        # TODO(synk): stride > 1 needs strided in-plane windows in the kernel.
        raise NotImplementedError("disconv_forward Pallas kernel supports stride=1")

    Dp, Hp, Wp = D + 2 * p, H + 2 * p, W + 2 * p
    Do = (Dp - k) // s + 1
    Ho = (Hp - k) // s + 1
    Wo = (Wp - k) // s + 1

    # ---- channels-last, bf16, spatial zero padding (O(1x input) traffic) ----
    xt = jnp.transpose(x, (0, 2, 3, 4, 1)).astype(jnp.bfloat16)   # (N,D,H,W,Cin)
    xp = jnp.pad(xt, ((0, 0), (p, p), (p, p), (p, p), (0, 0)))    # (N,Dp,Hp,Wp,Cin)

    # ---- weight (Cout,Cin,kd,kh,kw) -> (kd*kh*kw, Cin, Cout) bf16, bias f32 ----
    wt = jnp.transpose(weight, (2, 3, 4, 1, 0)).reshape(k * k * k, Cin, Cout)
    wt = wt.astype(jnp.bfloat16)
    b2 = bias.reshape(1, Cout).astype(jnp.float32)

    # ---- block specs ----
    def x_spec(dz):
        # one depth plane; block size 1 on the depth axis => block index is the
        # element offset do*s + dz (same array passed k times, once per tap).
        return pl.BlockSpec((None, None, Hp, Wp, Cin),
                            lambda n, do, dz=dz: (n, do * s + dz, 0, 0, 0))

    in_specs = [x_spec(dz) for dz in range(k)]
    in_specs.append(pl.BlockSpec((k * k * k, Cin, Cout),
                                 lambda n, do: (0, 0, 0)))          # resident weight
    in_specs.append(pl.BlockSpec((1, Cout), lambda n, do: (0, 0)))  # resident bias
    out_spec = pl.BlockSpec((None, None, Ho, Wo, Cout),
                            lambda n, do: (n, do, 0, 0, 0))

    # ---- VMEM limit derived from actual block sizes and chip capacity ----
    est = 2 * (k * _vmem_block_bytes((Hp, Wp, Cin), 2)          # x planes (dbl-buf)
               + _vmem_block_bytes((k * k * k, Cin, Cout), 2)   # weight
               + _vmem_block_bytes((1, Cout), 4)                # bias
               + _vmem_block_bytes((Ho, Wo, Cout), 4))          # output block
    try:
        vmem_cap = int(pltpu.get_tpu_info().vmem_capacity_bytes)
    except Exception:
        vmem_cap = 64 * 1024 * 1024   # assume v7x (most restrictive per-core VMEM)
    need = est + (8 << 20)            # blocks + compiler-internal scratch slack
    soft_cap = int(0.6 * vmem_cap)    # ~38 MiB on v7x, ~77 MiB on v5e/v6e
    vmem_limit = int(min(max(need, 32 << 20),
                         max(soft_cap, min(need, vmem_cap - (16 << 20)))))

    kern = functools.partial(_disconv_kernel, k=k, stride=s, Ho=Ho, Wo=Wo,
                             inv_cout=1.0 / Cout)

    out = pl.pallas_call(
        kern,
        out_shape=jax.ShapeDtypeStruct((N, Do, Ho, Wo, Cout), jnp.float32),
        grid_spec=pltpu.PrefetchScalarGridSpec(
            num_scalar_prefetch=0,
            grid=(N, Do),
            in_specs=in_specs,
            out_specs=out_spec,
        ),
        compiler_params=pltpu.CompilerParams(
            dimension_semantics=("parallel", "parallel"),
            vmem_limit_bytes=vmem_limit,
        ),
    )(*([xp] * k), wt, b2)

    # Back to NCDHW only at the module boundary (keep NDHWC inside a model).
    return jnp.transpose(out, (0, 4, 1, 2, 3))


# ---------------------------------------------------------------------------
# Pure-JAX reference (bf16 conv operands, f32 accumulation — matches kernel)
# ---------------------------------------------------------------------------
def _reference(x, weight, bias, stride, padding):
    conv = jax.lax.conv_general_dilated(
        x.astype(jnp.bfloat16), weight.astype(jnp.bfloat16),
        window_strides=(stride, stride, stride),
        padding=[(padding, padding)] * 3,
        dimension_numbers=("NCDHW", "OIDHW", "NCDHW"),
        preferred_element_type=jnp.float32)
    conv = conv + bias.reshape(1, -1, 1, 1, 1)
    ms = jnp.mean(conv * conv, axis=1, keepdims=True)
    y = conv / jnp.sqrt(ms + 1e-8)
    return jnp.where(y > 0, y, 0.2 * y)


if __name__ == "__main__":
    # Small shapes consistent with the module: 5-D NCDHW input for Conv3d.
    N, Cin, Cout = 2, 4, 8
    D = H = W = 8
    ksize, stride, padding = 3, 1, 1

    key = jax.random.PRNGKey(0)
    kx, kw, kb = jax.random.split(key, 3)

    x = jax.random.normal(kx, (N, Cin, D, H, W), dtype=jnp.float32)

    # Deterministic parameter init (uniform, PyTorch-like fan-in bound).
    fan_in = Cin * ksize * ksize * ksize
    bound = 1.0 / (fan_in ** 0.5)
    weight = jax.random.uniform(kw, (Cout, Cin, ksize, ksize, ksize),
                                minval=-bound, maxval=bound, dtype=jnp.float32)
    bias = jax.random.uniform(kb, (Cout,), minval=-bound, maxval=bound,
                              dtype=jnp.float32)

    out = disconv_forward(x, weight, bias,
                          kernel_size=ksize, stride=stride, padding=padding)
    out = jax.block_until_ready(out)

    ref = _reference(x, weight, bias, stride, padding)
    assert out.shape == ref.shape == (N, Cout, D, H, W)
    err = float(jnp.max(jnp.abs(out - ref)))
    assert err < 5e-3, f"max abs err {err}"

    print("KERNEL_OK")
</pallas_src>

<mosaic_0001>
module attributes {stable_mosaic.version = 11 : i64} {
  func.func @_disconv_kernel(%arg0: i32, %arg1: i32, %arg2: memref<1x1x10x10x4xbf16, #tpu.memory_space<vmem>>, %arg3: memref<1x1x10x10x4xbf16, #tpu.memory_space<vmem>>, %arg4: memref<1x1x10x10x4xbf16, #tpu.memory_space<vmem>>, %arg5: memref<27x4x8xbf16, #tpu.memory_space<vmem>>, %arg6: memref<1x8xf32, #tpu.memory_space<vmem>>, %arg7: memref<1x1x8x8x8xf32, #tpu.memory_space<vmem>>) attributes {dimension_semantics = [#tpu.dimension_semantics<parallel>, #tpu.dimension_semantics<parallel>], iteration_bounds = array<i64: 2, 8>, scalar_prefetch = 0 : i64, scratch_operands = 0 : i64, tpu.core_type = #tpu.core_type<tc>, window_params = [{transform_indices = @transform_0, window_bounds = array<i64: 1, 1, 10, 10, 4>}, {transform_indices = @transform_1, window_bounds = array<i64: 1, 1, 10, 10, 4>}, {transform_indices = @transform_2, window_bounds = array<i64: 1, 1, 10, 10, 4>}, {pipeline_mode = #tpu.pipeline_mode<synchronous>, transform_indices = @transform_3, window_bounds = array<i64: 27, 4, 8>}, {pipeline_mode = #tpu.pipeline_mode<synchronous>, transform_indices = @transform_4, window_bounds = array<i64: 1, 8>}, {transform_indices = @transform_5, window_bounds = array<i64: 1, 1, 8, 8, 8>}]} {
    %c0 = arith.constant 0 : index
    %c0_0 = arith.constant 0 : index
    %0 = vector.load %arg6[%c0, %c0_0] : memref<1x8xf32, #tpu.memory_space<vmem>>, vector<1x8xf32>
    %c0_i32 = arith.constant 0 : i32
    %c8_i32 = arith.constant 8 : i32
    %1 = arith.addi %c0_i32, %c8_i32 : i32
    %c1_i32 = arith.constant 1 : i32
    scf.for %arg8 = %c0_i32 to %1 step %c1_i32  : i32 {
      %cst = arith.constant 0.000000e+00 : f32
      %2 = vector.broadcast %cst : f32 to vector<8x8xf32>
      %c1_i32_2 = arith.constant 1 : i32
      %3 = arith.muli %arg8, %c1_i32_2 : i32
      %c0_i32_3 = arith.constant 0 : i32
      %4 = arith.addi %3, %c0_i32_3 : i32
      %c0_4 = arith.constant 0 : index
      %c0_5 = arith.constant 0 : index
      %5 = arith.index_cast %4 : i32 to index
      %c0_6 = arith.constant 0 : index
      %c0_7 = arith.constant 0 : index
      %6 = vector.load %arg2[%c0_4, %c0_5, %5, %c0_6, %c0_7] : memref<1x1x10x10x4xbf16, #tpu.memory_space<vmem>>, vector<1x1x1x10x4xbf16>
      %7 = vector.shape_cast %6 : vector<1x1x1x10x4xbf16> to vector<10x4xbf16>
      %8 = vector.extract_strided_slice %7 {offsets = [0, 0], sizes = [8, 4], strides = [1, 1]} : vector<10x4xbf16> to vector<8x4xbf16>
      %c0_8 = arith.constant 0 : index
      %c0_9 = arith.constant 0 : index
      %c0_10 = arith.constant 0 : index
      %9 = vector.load %arg5[%c0_8, %c0_9, %c0_10] : memref<27x4x8xbf16, #tpu.memory_space<vmem>>, vector<1x4x8xbf16>
      %10 = vector.shape_cast %9 : vector<1x4x8xbf16> to vector<4x8xbf16>
      %cst_11 = arith.constant dense<0.000000e+00> : vector<8x8xf32>
      %11 = tpu.matmul %8, %10, %cst_11 {dimension_numbers = #tpu.dot_dimension_numbers<[1], [0], [0], [1], [0, 0, 1, 1], [], []>} : vector<8x4xbf16>, vector<4x8xbf16>, vector<8x8xf32> -> vector<8x8xf32>
      %12 = arith.addf %2, %11 : vector<8x8xf32>
      %13 = vector.extract_strided_slice %7 {offsets = [1, 0], sizes = [8, 4], strides = [1, 1]} : vector<10x4xbf16> to vector<8x4xbf16>
      %c1 = arith.constant 1 : index
      %c0_12 = arith.constant 0 : index
      %c0_13 = arith.constant 0 : index
      %14 = vector.load %arg5[%c1, %c0_12, %c0_13] : memref<27x4x8xbf16, #tpu.memory_space<vmem>>, vector<1x4x8xbf16>
      %15 = vector.shape_cast %14 : vector<1x4x8xbf16> to vector<4x8xbf16>
      %cst_14 = arith.constant dense<0.000000e+00> : vector<8x8xf32>
      %16 = tpu.matmul %13, %15, %cst_14 {dimension_numbers = #tpu.dot_dimension_numbers<[1], [0], [0], [1], [0, 0, 1, 1], [], []>} : vector<8x4xbf16>, vector<4x8xbf16>, vector<8x8xf32> -> vector<8x8xf32>
      %17 = arith.addf %12, %16 : vector<8x8xf32>
      %18 = vector.extract_strided_slice %7 {offsets = [2, 0], sizes = [8, 4], strides = [1, 1]} : vector<10x4xbf16> to vector<8x4xbf16>
      %c2 = arith.constant 2 : index
      %c0_15 = arith.constant 0 : index
      %c0_16 = arith.constant 0 : index
      %19 = vector.load %arg5[%c2, %c0_15, %c0_16] : memref<27x4x8xbf16, #tpu.memory_space<vmem>>, vector<1x4x8xbf16>
      %20 = vector.shape_cast %19 : vector<1x4x8xbf16> to vector<4x8xbf16>
      %cst_17 = arith.constant dense<0.000000e+00> : vector<8x8xf32>
      %21 = tpu.matmul %18, %20, %cst_17 {dimension_numbers = #tpu.dot_dimension_numbers<[1], [0], [0], [1], [0, 0, 1, 1], [], []>} : vector<8x4xbf16>, vector<4x8xbf16>, vector<8x8xf32> -> vector<8x8xf32>
      %22 = arith.addf %17, %21 : vector<8x8xf32>
      %c1_i32_18 = arith.constant 1 : i32
      %23 = arith.muli %arg8, %c1_i32_18 : i32
      %c1_i32_19 = arith.constant 1 : i32
      %24 = arith.addi %23, %c1_i32_19 : i32
      %c0_20 = arith.constant 0 : index
      %c0_21 = arith.constant 0 : index
      %25 = arith.index_cast %24 : i32 to index
      %c0_22 = arith.constant 0 : index
      %c0_23 = arith.constant 0 : index
      %26 = vector.load %arg2[%c0_20, %c0_21, %25, %c0_22, %c0_23] : memref<1x1x10x10x4xbf16, #tpu.memory_space<vmem>>, vector<1x1x1x10x4xbf16>
      %27 = vector.shape_cast %26 : vector<1x1x1x10x4xbf16> to vector<10x4xbf16>
      %28 = vector.extract_strided_slice %27 {offsets = [0, 0], sizes = [8, 4], strides = [1, 1]} : vector<10x4xbf16> to vector<8x4xbf16>
      %c3 = arith.constant 3 : index
      %c0_24 = arith.constant 0 : index
      %c0_25 = arith.constant 0 : index
      %29 = vector.load %arg5[%c3, %c0_24, %c0_25] : memref<27x4x8xbf16, #tpu.memory_space<vmem>>, vector<1x4x8xbf16>
      %30 = vector.shape_cast %29 : vector<1x4x8xbf16> to vector<4x8xbf16>
      %cst_26 = arith.constant dense<0.000000e+00> : vector<8x8xf32>
      %31 = tpu.matmul %28, %30, %cst_26 {dimension_numbers = #tpu.dot_dimension_numbers<[1], [0], [0], [1], [0, 0, 1, 1], [], []>} : vector<8x4xbf16>, vector<4x8xbf16>, vector<8x8xf32> -> vector<8x8xf32>
      %32 = arith.addf %22, %31 : vector<8x8xf32>
      %33 = vector.extract_strided_slice %27 {offsets = [1, 0], sizes = [8, 4], strides = [1, 1]} : vector<10x4xbf16> to vector<8x4xbf16>
      %c4 = arith.constant 4 : index
      %c0_27 = arith.constant 0 : index
      %c0_28 = arith.constant 0 : index
      %34 = vector.load %arg5[%c4, %c0_27, %c0_28] : memref<27x4x8xbf16, #tpu.memory_space<vmem>>, vector<1x4x8xbf16>
      %35 = vector.shape_cast %34 : vector<1x4x8xbf16> to vector<4x8xbf16>
      %cst_29 = arith.constant dense<0.000000e+00> : vector<8x8xf32>
      %36 = tpu.matmul %33, %35, %cst_29 {dimension_numbers = #tpu.dot_dimension_numbers<[1], [0], [0], [1], [0, 0, 1, 1], [], []>} : vector<8x4xbf16>, vector<4x8xbf16>, vector<8x8xf32> -> vector<8x8xf32>
      %37 = arith.addf %32, %36 : vector<8x8xf32>
      %38 = vector.extract_strided_slice %27 {offsets = [2, 0], sizes = [8, 4], strides = [1, 1]} : vector<10x4xbf16> to vector<8x4xbf16>
      %c5 = arith.constant 5 : index
      %c0_30 = arith.constant 0 : index
      %c0_31 = arith.constant 0 : index
      %39 = vector.load %arg5[%c5, %c0_30, %c0_31] : memref<27x4x8xbf16, #tpu.memory_space<vmem>>, vector<1x4x8xbf16>
      %40 = vector.shape_cast %39 : vector<1x4x8xbf16> to vector<4x8xbf16>
      %cst_32 = arith.constant dense<0.000000e+00> : vector<8x8xf32>
      %41 = tpu.matmul %38, %40, %cst_32 {dimension_numbers = #tpu.dot_dimension_numbers<[1], [0], [0], [1], [0, 0, 1, 1], [], []>} : vector<8x4xbf16>, vector<4x8xbf16>, vector<8x8xf32> -> vector<8x8xf32>
      %42 = arith.addf %37, %41 : vector<8x8xf32>
      %c1_i32_33 = arith.constant 1 : i32
      %43 = arith.muli %arg8, %c1_i32_33 : i32
      %c2_i32 = arith.constant 2 : i32
      %44 = arith.addi %43, %c2_i32 : i32
      %c0_34 = arith.constant 0 : index
      %c0_35 = arith.constant 0 : index
      %45 = arith.index_cast %44 : i32 to index
      %c0_36 = arith.constant 0 : index
      %c0_37 = arith.constant 0 : index
      %46 = vector.load %arg2[%c0_34, %c0_35, %45, %c0_36, %c0_37] : memref<1x1x10x10x4xbf16, #tpu.memory_space<vmem>>, vector<1x1x1x10x4xbf16>
      %47 = vector.shape_cast %46 : vector<1x1x1x10x4xbf16> to vector<10x4xbf16>
      %48 = vector.extract_strided_slice %47 {offsets = [0, 0], sizes = [8, 4], strides = [1, 1]} : vector<10x4xbf16> to vector<8x4xbf16>
      %c6 = arith.constant 6 : index
      %c0_38 = arith.constant 0 : index
      %c0_39 = arith.constant 0 : index
      %49 = vector.load %arg5[%c6, %c0_38, %c0_39] : memref<27x4x8xbf16, #tpu.memory_space<vmem>>, vector<1x4x8xbf16>
      %50 = vector.shape_cast %49 : vector<1x4x8xbf16> to vector<4x8xbf16>
      %cst_40 = arith.constant dense<0.000000e+00> : vector<8x8xf32>
      %51 = tpu.matmul %48, %50, %cst_40 {dimension_numbers = #tpu.dot_dimension_numbers<[1], [0], [0], [1], [0, 0, 1, 1], [], []>} : vector<8x4xbf16>, vector<4x8xbf16>, vector<8x8xf32> -> vector<8x8xf32>
      %52 = arith.addf %42, %51 : vector<8x8xf32>
      %53 = vector.extract_strided_slice %47 {offsets = [1, 0], sizes = [8, 4], strides = [1, 1]} : vector<10x4xbf16> to vector<8x4xbf16>
      %c7 = arith.constant 7 : index
      %c0_41 = arith.constant 0 : index
      %c0_42 = arith.constant 0 : index
      %54 = vector.load %arg5[%c7, %c0_41, %c0_42] : memref<27x4x8xbf16, #tpu.memory_space<vmem>>, vector<1x4x8xbf16>
      %55 = vector.shape_cast %54 : vector<1x4x8xbf16> to vector<4x8xbf16>
      %cst_43 = arith.constant dense<0.000000e+00> : vector<8x8xf32>
      %56 = tpu.matmul %53, %55, %cst_43 {dimension_numbers = #tpu.dot_dimension_numbers<[1], [0], [0], [1], [0, 0, 1, 1], [], []>} : vector<8x4xbf16>, vector<4x8xbf16>, vector<8x8xf32> -> vector<8x8xf32>
      %57 = arith.addf %52, %56 : vector<8x8xf32>
      %58 = vector.extract_strided_slice %47 {offsets = [2, 0], sizes = [8, 4], strides = [1, 1]} : vector<10x4xbf16> to vector<8x4xbf16>
      %c8 = arith.constant 8 : index
      %c0_44 = arith.constant 0 : index
      %c0_45 = arith.constant 0 : index
      %59 = vector.load %arg5[%c8, %c0_44, %c0_45] : memref<27x4x8xbf16, #tpu.memory_space<vmem>>, vector<1x4x8xbf16>
      %60 = vector.shape_cast %59 : vector<1x4x8xbf16> to vector<4x8xbf16>
      %cst_46 = arith.constant dense<0.000000e+00> : vector<8x8xf32>
      %61 = tpu.matmul %58, %60, %cst_46 {dimension_numbers = #tpu.dot_dimension_numbers<[1], [0], [0], [1], [0, 0, 1, 1], [], []>} : vector<8x4xbf16>, vector<4x8xbf16>, vector<8x8xf32> -> vector<8x8xf32>
      %62 = arith.addf %57, %61 : vector<8x8xf32>
      %c1_i32_47 = arith.constant 1 : i32
      %63 = arith.muli %arg8, %c1_i32_47 : i32
      %c0_i32_48 = arith.constant 0 : i32
      %64 = arith.addi %63, %c0_i32_48 : i32
      %c0_49 = arith.constant 0 : index
      %c0_50 = arith.constant 0 : index
      %65 = arith.index_cast %64 : i32 to index
      %c0_51 = arith.constant 0 : index
      %c0_52 = arith.constant 0 : index
      %66 = vector.load %arg3[%c0_49, %c0_50, %65, %c0_51, %c0_52] : memref<1x1x10x10x4xbf16, #tpu.memory_space<vmem>>, vector<1x1x1x10x4xbf16>
      %67 = vector.shape_cast %66 : vector<1x1x1x10x4xbf16> to vector<10x4xbf16>
      %68 = vector.extract_strided_slice %67 {offsets = [0, 0], sizes = [8, 4], strides = [1, 1]} : vector<10x4xbf16> to vector<8x4xbf16>
      %c9 = arith.constant 9 : index
      %c0_53 = arith.constant 0 : index
      %c0_54 = arith.constant 0 : index
      %69 = vector.load %arg5[%c9, %c0_53, %c0_54] : memref<27x4x8xbf16, #tpu.memory_space<vmem>>, vector<1x4x8xbf16>
      %70 = vector.shape_cast %69 : vector<1x4x8xbf16> to vector<4x8xbf16>
      %cst_55 = arith.constant dense<0.000000e+00> : vector<8x8xf32>
      %71 = tpu.matmul %68, %70, %cst_55 {dimension_numbers = #tpu.dot_dimension_numbers<[1], [0], [0], [1], [0, 0, 1, 1], [], []>} : vector<8x4xbf16>, vector<4x8xbf16>, vector<8x8xf32> -> vector<8x8xf32>
      %72 = arith.addf %62, %71 : vector<8x8xf32>
      %73 = vector.extract_strided_slice %67 {offsets = [1, 0], sizes = [8, 4], strides = [1, 1]} : vector<10x4xbf16> to vector<8x4xbf16>
      %c10 = arith.constant 10 : index
      %c0_56 = arith.constant 0 : index
      %c0_57 = arith.constant 0 : index
      %74 = vector.load %arg5[%c10, %c0_56, %c0_57] : memref<27x4x8xbf16, #tpu.memory_space<vmem>>, vector<1x4x8xbf16>
      %75 = vector.shape_cast %74 : vector<1x4x8xbf16> to vector<4x8xbf16>
      %cst_58 = arith.constant dense<0.000000e+00> : vector<8x8xf32>
      %76 = tpu.matmul %73, %75, %cst_58 {dimension_numbers = #tpu.dot_dimension_numbers<[1], [0], [0], [1], [0, 0, 1, 1], [], []>} : vector<8x4xbf16>, vector<4x8xbf16>, vector<8x8xf32> -> vector<8x8xf32>
      %77 = arith.addf %72, %76 : vector<8x8xf32>
      %78 = vector.extract_strided_slice %67 {offsets = [2, 0], sizes = [8, 4], strides = [1, 1]} : vector<10x4xbf16> to vector<8x4xbf16>
      %c11 = arith.constant 11 : index
      %c0_59 = arith.constant 0 : index
      %c0_60 = arith.constant 0 : index
      %79 = vector.load %arg5[%c11, %c0_59, %c0_60] : memref<27x4x8xbf16, #tpu.memory_space<vmem>>, vector<1x4x8xbf16>
      %80 = vector.shape_cast %79 : vector<1x4x8xbf16> to vector<4x8xbf16>
      %cst_61 = arith.constant dense<0.000000e+00> : vector<8x8xf32>
      %81 = tpu.matmul %78, %80, %cst_61 {dimension_numbers = #tpu.dot_dimension_numbers<[1], [0], [0], [1], [0, 0, 1, 1], [], []>} : vector<8x4xbf16>, vector<4x8xbf16>, vector<8x8xf32> -> vector<8x8xf32>
      %82 = arith.addf %77, %81 : vector<8x8xf32>
      %c1_i32_62 = arith.constant 1 : i32
      %83 = arith.muli %arg8, %c1_i32_62 : i32
      %c1_i32_63 = arith.constant 1 : i32
      %84 = arith.addi %83, %c1_i32_63 : i32
      %c0_64 = arith.constant 0 : index
      %c0_65 = arith.constant 0 : index
      %85 = arith.index_cast %84 : i32 to index
      %c0_66 = arith.constant 0 : index
      %c0_67 = arith.constant 0 : index
      %86 = vector.load %arg3[%c0_64, %c0_65, %85, %c0_66, %c0_67] : memref<1x1x10x10x4xbf16, #tpu.memory_space<vmem>>, vector<1x1x1x10x4xbf16>
      %87 = vector.shape_cast %86 : vector<1x1x1x10x4xbf16> to vector<10x4xbf16>
      %88 = vector.extract_strided_slice %87 {offsets = [0, 0], sizes = [8, 4], strides = [1, 1]} : vector<10x4xbf16> to vector<8x4xbf16>
      %c12 = arith.constant 12 : index
      %c0_68 = arith.constant 0 : index
      %c0_69 = arith.constant 0 : index
      %89 = vector.load %arg5[%c12, %c0_68, %c0_69] : memref<27x4x8xbf16, #tpu.memory_space<vmem>>, vector<1x4x8xbf16>
      %90 = vector.shape_cast %89 : vector<1x4x8xbf16> to vector<4x8xbf16>
      %cst_70 = arith.constant dense<0.000000e+00> : vector<8x8xf32>
      %91 = tpu.matmul %88, %90, %cst_70 {dimension_numbers = #tpu.dot_dimension_numbers<[1], [0], [0], [1], [0, 0, 1, 1], [], []>} : vector<8x4xbf16>, vector<4x8xbf16>, vector<8x8xf32> -> vector<8x8xf32>
      %92 = arith.addf %82, %91 : vector<8x8xf32>
      %93 = vector.extract_strided_slice %87 {offsets = [1, 0], sizes = [8, 4], strides = [1, 1]} : vector<10x4xbf16> to vector<8x4xbf16>
      %c13 = arith.constant 13 : index
      %c0_71 = arith.constant 0 : index
      %c0_72 = arith.constant 0 : index
      %94 = vector.load %arg5[%c13, %c0_71, %c0_72] : memref<27x4x8xbf16, #tpu.memory_space<vmem>>, vector<1x4x8xbf16>
      %95 = vector.shape_cast %94 : vector<1x4x8xbf16> to vector<4x8xbf16>
      %cst_73 = arith.constant dense<0.000000e+00> : vector<8x8xf32>
      %96 = tpu.matmul %93, %95, %cst_73 {dimension_numbers = #tpu.dot_dimension_numbers<[1], [0], [0], [1], [0, 0, 1, 1], [], []>} : vector<8x4xbf16>, vector<4x8xbf16>, vector<8x8xf32> -> vector<8x8xf32>
      %97 = arith.addf %92, %96 : vector<8x8xf32>
      %98 = vector.extract_strided_slice %87 {offsets = [2, 0], sizes = [8, 4], strides = [1, 1]} : vector<10x4xbf16> to vector<8x4xbf16>
      %c14 = arith.constant 14 : index
      %c0_74 = arith.constant 0 : index
      %c0_75 = arith.constant 0 : index
      %99 = vector.load %arg5[%c14, %c0_74, %c0_75] : memref<27x4x8xbf16, #tpu.memory_space<vmem>>, vector<1x4x8xbf16>
      %100 = vector.shape_cast %99 : vector<1x4x8xbf16> to vector<4x8xbf16>
      %cst_76 = arith.constant dense<0.000000e+00> : vector<8x8xf32>
      %101 = tpu.matmul %98, %100, %cst_76 {dimension_numbers = #tpu.dot_dimension_numbers<[1], [0], [0], [1], [0, 0, 1, 1], [], []>} : vector<8x4xbf16>, vector<4x8xbf16>, vector<8x8xf32> -> vector<8x8xf32>
      %102 = arith.addf %97, %101 : vector<8x8xf32>
      %c1_i32_77 = arith.constant 1 : i32
      %103 = arith.muli %arg8, %c1_i32_77 : i32
      %c2_i32_78 = arith.constant 2 : i32
      %104 = arith.addi %103, %c2_i32_78 : i32
      %c0_79 = arith.constant 0 : index
      %c0_80 = arith.constant 0 : index
      %105 = arith.index_cast %104 : i32 to index
      %c0_81 = arith.constant 0 : index
      %c0_82 = arith.constant 0 : index
      %106 = vector.load %arg3[%c0_79, %c0_80, %105, %c0_81, %c0_82] : memref<1x1x10x10x4xbf16, #tpu.memory_space<vmem>>, vector<1x1x1x10x4xbf16>
      %107 = vector.shape_cast %106 : vector<1x1x1x10x4xbf16> to vector<10x4xbf16>
      %108 = vector.extract_strided_slice %107 {offsets = [0, 0], sizes = [8, 4], strides = [1, 1]} : vector<10x4xbf16> to vector<8x4xbf16>
      %c15 = arith.constant 15 : index
      %c0_83 = arith.constant 0 : index
      %c0_84 = arith.constant 0 : index
      %109 = vector.load %arg5[%c15, %c0_83, %c0_84] : memref<27x4x8xbf16, #tpu.memory_space<vmem>>, vector<1x4x8xbf16>
      %110 = vector.shape_cast %109 : vector<1x4x8xbf16> to vector<4x8xbf16>
      %cst_85 = arith.constant dense<0.000000e+00> : vector<8x8xf32>
      %111 = tpu.matmul %108, %110, %cst_85 {dimension_numbers = #tpu.dot_dimension_numbers<[1], [0], [0], [1], [0, 0, 1, 1], [], []>} : vector<8x4xbf16>, vector<4x8xbf16>, vector<8x8xf32> -> vector<8x8xf32>
      %112 = arith.addf %102, %111 : vector<8x8xf32>
      %113 = vector.extract_strided_slice %107 {offsets = [1, 0], sizes = [8, 4], strides = [1, 1]} : vector<10x4xbf16> to vector<8x4xbf16>
      %c16 = arith.constant 16 : index
      %c0_86 = arith.constant 0 : index
      %c0_87 = arith.constant 0 : index
      %114 = vector.load %arg5[%c16, %c0_86, %c0_87] : memref<27x4x8xbf16, #tpu.memory_space<vmem>>, vector<1x4x8xbf16>
      %115 = vector.shape_cast %114 : vector<1x4x8xbf16> to vector<4x8xbf16>
      %cst_88 = arith.constant dense<0.000000e+00> : vector<8x8xf32>
      %116 = tpu.matmul %113, %115, %cst_88 {dimension_numbers = #tpu.dot_dimension_numbers<[1], [0], [0], [1], [0, 0, 1, 1], [], []>} : vector<8x4xbf16>, vector<4x8xbf16>, vector<8x8xf32> -> vector<8x8xf32>
      %117 = arith.addf %112, %116 : vector<8x8xf32>
      %118 = vector.extract_strided_slice %107 {offsets = [2, 0], sizes = [8, 4], strides = [1, 1]} : vector<10x4xbf16> to vector<8x4xbf16>
      %c17 = arith.constant 17 : index
      %c0_89 = arith.constant 0 : index
      %c0_90 = arith.constant 0 : index
      %119 = vector.load %arg5[%c17, %c0_89, %c0_90] : memref<27x4x8xbf16, #tpu.memory_space<vmem>>, vector<1x4x8xbf16>
      %120 = vector.shape_cast %119 : vector<1x4x8xbf16> to vector<4x8xbf16>
      %cst_91 = arith.constant dense<0.000000e+00> : vector<8x8xf32>
      %121 = tpu.matmul %118, %120, %cst_91 {dimension_numbers = #tpu.dot_dimension_numbers<[1], [0], [0], [1], [0, 0, 1, 1], [], []>} : vector<8x4xbf16>, vector<4x8xbf16>, vector<8x8xf32> -> vector<8x8xf32>
      %122 = arith.addf %117, %121 : vector<8x8xf32>
      %c1_i32_92 = arith.constant 1 : i32
      %123 = arith.muli %arg8, %c1_i32_92 : i32
      %c0_i32_93 = arith.constant 0 : i32
      %124 = arith.addi %123, %c0_i32_93 : i32
      %c0_94 = arith.constant 0 : index
      %c0_95 = arith.constant 0 : index
      %125 = arith.index_cast %124 : i32 to index
      %c0_96 = arith.constant 0 : index
      %c0_97 = arith.constant 0 : index
      %126 = vector.load %arg4[%c0_94, %c0_95, %125, %c0_96, %c0_97] : memref<1x1x10x10x4xbf16, #tpu.memory_space<vmem>>, vector<1x1x1x10x4xbf16>
      %127 = vector.shape_cast %126 : vector<1x1x1x10x4xbf16> to vector<10x4xbf16>
      %128 = vector.extract_strided_slice %127 {offsets = [0, 0], sizes = [8, 4], strides = [1, 1]} : vector<10x4xbf16> to vector<8x4xbf16>
      %c18 = arith.constant 18 : index
      %c0_98 = arith.constant 0 : index
      %c0_99 = arith.constant 0 : index
      %129 = vector.load %arg5[%c18, %c0_98, %c0_99] : memref<27x4x8xbf16, #tpu.memory_space<vmem>>, vector<1x4x8xbf16>
      %130 = vector.shape_cast %129 : vector<1x4x8xbf16> to vector<4x8xbf16>
      %cst_100 = arith.constant dense<0.000000e+00> : vector<8x8xf32>
      %131 = tpu.matmul %128, %130, %cst_100 {dimension_numbers = #tpu.dot_dimension_numbers<[1], [0], [0], [1], [0, 0, 1, 1], [], []>} : vector<8x4xbf16>, vector<4x8xbf16>, vector<8x8xf32> -> vector<8x8xf32>
      %132 = arith.addf %122, %131 : vector<8x8xf32>
      %133 = vector.extract_strided_slice %127 {offsets = [1, 0], sizes = [8, 4], strides = [1, 1]} : vector<10x4xbf16> to vector<8x4xbf16>
      %c19 = arith.constant 19 : index
      %c0_101 = arith.constant 0 : index
      %c0_102 = arith.constant 0 : index
      %134 = vector.load %arg5[%c19, %c0_101, %c0_102] : memref<27x4x8xbf16, #tpu.memory_space<vmem>>, vector<1x4x8xbf16>
      %135 = vector.shape_cast %134 : vector<1x4x8xbf16> to vector<4x8xbf16>
      %cst_103 = arith.constant dense<0.000000e+00> : vector<8x8xf32>
      %136 = tpu.matmul %133, %135, %cst_103 {dimension_numbers = #tpu.dot_dimension_numbers<[1], [0], [0], [1], [0, 0, 1, 1], [], []>} : vector<8x4xbf16>, vector<4x8xbf16>, vector<8x8xf32> -> vector<8x8xf32>
      %137 = arith.addf %132, %136 : vector<8x8xf32>
      %138 = vector.extract_strided_slice %127 {offsets = [2, 0], sizes = [8, 4], strides = [1, 1]} : vector<10x4xbf16> to vector<8x4xbf16>
      %c20 = arith.constant 20 : index
      %c0_104 = arith.constant 0 : index
      %c0_105 = arith.constant 0 : index
      %139 = vector.load %arg5[%c20, %c0_104, %c0_105] : memref<27x4x8xbf16, #tpu.memory_space<vmem>>, vector<1x4x8xbf16>
      %140 = vector.shape_cast %139 : vector<1x4x8xbf16> to vector<4x8xbf16>
      %cst_106 = arith.constant dense<0.000000e+00> : vector<8x8xf32>
      %141 = tpu.matmul %138, %140, %cst_106 {dimension_numbers = #tpu.dot_dimension_numbers<[1], [0], [0], [1], [0, 0, 1, 1], [], []>} : vector<8x4xbf16>, vector<4x8xbf16>, vector<8x8xf32> -> vector<8x8xf32>
      %142 = arith.addf %137, %141 : vector<8x8xf32>
      %c1_i32_107 = arith.constant 1 : i32
      %143 = arith.muli %arg8, %c1_i32_107 : i32
      %c1_i32_108 = arith.constant 1 : i32
      %144 = arith.addi %143, %c1_i32_108 : i32
      %c0_109 = arith.constant 0 : index
      %c0_110 = arith.constant 0 : index
      %145 = arith.index_cast %144 : i32 to index
      %c0_111 = arith.constant 0 : index
      %c0_112 = arith.constant 0 : index
      %146 = vector.load %arg4[%c0_109, %c0_110, %145, %c0_111, %c0_112] : memref<1x1x10x10x4xbf16, #tpu.memory_space<vmem>>, vector<1x1x1x10x4xbf16>
      %147 = vector.shape_cast %146 : vector<1x1x1x10x4xbf16> to vector<10x4xbf16>
      %148 = vector.extract_strided_slice %147 {offsets = [0, 0], sizes = [8, 4], strides = [1, 1]} : vector<10x4xbf16> to vector<8x4xbf16>
      %c21 = arith.constant 21 : index
      %c0_113 = arith.constant 0 : index
      %c0_114 = arith.constant 0 : index
      %149 = vector.load %arg5[%c21, %c0_113, %c0_114] : memref<27x4x8xbf16, #tpu.memory_space<vmem>>, vector<1x4x8xbf16>
      %150 = vector.shape_cast %149 : vector<1x4x8xbf16> to vector<4x8xbf16>
      %cst_115 = arith.constant dense<0.000000e+00> : vector<8x8xf32>
      %151 = tpu.matmul %148, %150, %cst_115 {dimension_numbers = #tpu.dot_dimension_numbers<[1], [0], [0], [1], [0, 0, 1, 1], [], []>} : vector<8x4xbf16>, vector<4x8xbf16>, vector<8x8xf32> -> vector<8x8xf32>
      %152 = arith.addf %142, %151 : vector<8x8xf32>
      %153 = vector.extract_strided_slice %147 {offsets = [1, 0], sizes = [8, 4], strides = [1, 1]} : vector<10x4xbf16> to vector<8x4xbf16>
      %c22 = arith.constant 22 : index
      %c0_116 = arith.constant 0 : index
      %c0_117 = arith.constant 0 : index
      %154 = vector.load %arg5[%c22, %c0_116, %c0_117] : memref<27x4x8xbf16, #tpu.memory_space<vmem>>, vector<1x4x8xbf16>
      %155 = vector.shape_cast %154 : vector<1x4x8xbf16> to vector<4x8xbf16>
      %cst_118 = arith.constant dense<0.000000e+00> : vector<8x8xf32>
      %156 = tpu.matmul %153, %155, %cst_118 {dimension_numbers = #tpu.dot_dimension_numbers<[1], [0], [0], [1], [0, 0, 1, 1], [], []>} : vector<8x4xbf16>, vector<4x8xbf16>, vector<8x8xf32> -> vector<8x8xf32>
      %157 = arith.addf %152, %156 : vector<8x8xf32>
      %158 = vector.extract_strided_slice %147 {offsets = [2, 0], sizes = [8, 4], strides = [1, 1]} : vector<10x4xbf16> to vector<8x4xbf16>
      %c23 = arith.constant 23 : index
      %c0_119 = arith.constant 0 : index
      %c0_120 = arith.constant 0 : index
      %159 = vector.load %arg5[%c23, %c0_119, %c0_120] : memref<27x4x8xbf16, #tpu.memory_space<vmem>>, vector<1x4x8xbf16>
      %160 = vector.shape_cast %159 : vector<1x4x8xbf16> to vector<4x8xbf16>
      %cst_121 = arith.constant dense<0.000000e+00> : vector<8x8xf32>
      %161 = tpu.matmul %158, %160, %cst_121 {dimension_numbers = #tpu.dot_dimension_numbers<[1], [0], [0], [1], [0, 0, 1, 1], [], []>} : vector<8x4xbf16>, vector<4x8xbf16>, vector<8x8xf32> -> vector<8x8xf32>
      %162 = arith.addf %157, %161 : vector<8x8xf32>
      %c1_i32_122 = arith.constant 1 : i32
      %163 = arith.muli %arg8, %c1_i32_122 : i32
      %c2_i32_123 = arith.constant 2 : i32
      %164 = arith.addi %163, %c2_i32_123 : i32
      %c0_124 = arith.constant 0 : index
      %c0_125 = arith.constant 0 : index
      %165 = arith.index_cast %164 : i32 to index
      %c0_126 = arith.constant 0 : index
      %c0_127 = arith.constant 0 : index
      %166 = vector.load %arg4[%c0_124, %c0_125, %165, %c0_126, %c0_127] : memref<1x1x10x10x4xbf16, #tpu.memory_space<vmem>>, vector<1x1x1x10x4xbf16>
      %167 = vector.shape_cast %166 : vector<1x1x1x10x4xbf16> to vector<10x4xbf16>
      %168 = vector.extract_strided_slice %167 {offsets = [0, 0], sizes = [8, 4], strides = [1, 1]} : vector<10x4xbf16> to vector<8x4xbf16>
      %c24 = arith.constant 24 : index
      %c0_128 = arith.constant 0 : index
      %c0_129 = arith.constant 0 : index
      %169 = vector.load %arg5[%c24, %c0_128, %c0_129] : memref<27x4x8xbf16, #tpu.memory_space<vmem>>, vector<1x4x8xbf16>
      %170 = vector.shape_cast %169 : vector<1x4x8xbf16> to vector<4x8xbf16>
      %cst_130 = arith.constant dense<0.000000e+00> : vector<8x8xf32>
      %171 = tpu.matmul %168, %170, %cst_130 {dimension_numbers = #tpu.dot_dimension_numbers<[1], [0], [0], [1], [0, 0, 1, 1], [], []>} : vector<8x4xbf16>, vector<4x8xbf16>, vector<8x8xf32> -> vector<8x8xf32>
      %172 = arith.addf %162, %171 : vector<8x8xf32>
      %173 = vector.extract_strided_slice %167 {offsets = [1, 0], sizes = [8, 4], strides = [1, 1]} : vector<10x4xbf16> to vector<8x4xbf16>
      %c25 = arith.constant 25 : index
      %c0_131 = arith.constant 0 : index
      %c0_132 = arith.constant 0 : index
      %174 = vector.load %arg5[%c25, %c0_131, %c0_132] : memref<27x4x8xbf16, #tpu.memory_space<vmem>>, vector<1x4x8xbf16>
      %175 = vector.shape_cast %174 : vector<1x4x8xbf16> to vector<4x8xbf16>
      %cst_133 = arith.constant dense<0.000000e+00> : vector<8x8xf32>
      %176 = tpu.matmul %173, %175, %cst_133 {dimension_numbers = #tpu.dot_dimension_numbers<[1], [0], [0], [1], [0, 0, 1, 1], [], []>} : vector<8x4xbf16>, vector<4x8xbf16>, vector<8x8xf32> -> vector<8x8xf32>
      %177 = arith.addf %172, %176 : vector<8x8xf32>
      %178 = vector.extract_strided_slice %167 {offsets = [2, 0], sizes = [8, 4], strides = [1, 1]} : vector<10x4xbf16> to vector<8x4xbf16>
      %c26 = arith.constant 26 : index
      %c0_134 = arith.constant 0 : index
      %c0_135 = arith.constant 0 : index
      %179 = vector.load %arg5[%c26, %c0_134, %c0_135] : memref<27x4x8xbf16, #tpu.memory_space<vmem>>, vector<1x4x8xbf16>
      %180 = vector.shape_cast %179 : vector<1x4x8xbf16> to vector<4x8xbf16>
      %cst_136 = arith.constant dense<0.000000e+00> : vector<8x8xf32>
      %181 = tpu.matmul %178, %180, %cst_136 {dimension_numbers = #tpu.dot_dimension_numbers<[1], [0], [0], [1], [0, 0, 1, 1], [], []>} : vector<8x4xbf16>, vector<4x8xbf16>, vector<8x8xf32> -> vector<8x8xf32>
      %182 = arith.addf %177, %181 : vector<8x8xf32>
      %183 = vector.broadcast %0 : vector<1x8xf32> to vector<8x8xf32>
      %184 = arith.addf %182, %183 : vector<8x8xf32>
      %185 = arith.mulf %184, %184 : vector<8x8xf32>
      %cst_137 = arith.constant dense<0.000000e+00> : vector<8xf32>
      %186 = vector.multi_reduction <add>, %185, %cst_137 [1] : vector<8x8xf32> to vector<8xf32>
      %187 = vector.shape_cast %186 : vector<8xf32> to vector<8x1xf32>
      %cst_138 = arith.constant 1.250000e-01 : f32
      %188 = vector.broadcast %cst_138 : f32 to vector<8x1xf32>
      %189 = arith.mulf %187, %188 : vector<8x1xf32>
      %cst_139 = arith.constant 9.99999993E-9 : f32
      %190 = vector.broadcast %cst_139 : f32 to vector<8x1xf32>
      %191 = arith.addf %189, %190 : vector<8x1xf32>
      %192 = math.rsqrt %191 : vector<8x1xf32>
      %193 = vector.broadcast %192 : vector<8x1xf32> to vector<8x8xf32>
      %194 = arith.mulf %184, %193 : vector<8x8xf32>
      %cst_140 = arith.constant 2.000000e-01 : f32
      %195 = vector.broadcast %cst_140 : f32 to vector<8x8xf32>
      %196 = arith.mulf %195, %194 : vector<8x8xf32>
      %197 = arith.maximumf %194, %196 : vector<8x8xf32>
      %c0_141 = arith.constant 0 : index
      %c0_142 = arith.constant 0 : index
      %198 = arith.index_cast %arg8 : i32 to index
      %c0_143 = arith.constant 0 : index
      %c0_144 = arith.constant 0 : index
      %199 = vector.load %arg7[%c0_141, %c0_142, %198, %c0_143, %c0_144] : memref<1x1x8x8x8xf32, #tpu.memory_space<vmem>>, vector<1x1x1x8x8xf32>
      %200 = vector.shape_cast %199 : vector<1x1x1x8x8xf32> to vector<8x8xf32>
      %201 = vector.shape_cast %197 : vector<8x8xf32> to vector<1x1x1x8x8xf32>
      tpu.vector_store %arg7[%c0_141, %c0_142, %198, %c0_143, %c0_144], %201 {strides = array<i32>} : memref<1x1x8x8x8xf32, #tpu.memory_space<vmem>>, vector<1x1x1x8x8xf32>,
    }
    %c8_i32_1 = arith.constant 8 : i32
    return
  }
  func.func @transform_0(%arg0: i32, %arg1: i32) -> (i32, i32, i32, i32, i32) {
    %c1_i32 = arith.constant 1 : i32
    %0 = arith.muli %arg1, %c1_i32 : i32
    %c0_i32 = arith.constant 0 : i32
    %1 = arith.addi %0, %c0_i32 : i32
    %c0_i32_0 = arith.constant 0 : i32
    %c0_i32_1 = arith.constant 0 : i32
    %c0_i32_2 = arith.constant 0 : i32
    %c0_i32_3 = arith.constant 0 : i32
    return %arg0, %1, %c0_i32_0, %c0_i32_1, %c0_i32_2 : i32, i32, i32, i32, i32
  }
  func.func @transform_1(%arg0: i32, %arg1: i32) -> (i32, i32, i32, i32, i32) {
    %c1_i32 = arith.constant 1 : i32
    %0 = arith.muli %arg1, %c1_i32 : i32
    %c1_i32_0 = arith.constant 1 : i32
    %1 = arith.addi %0, %c1_i32_0 : i32
    %c0_i32 = arith.constant 0 : i32
    %c0_i32_1 = arith.constant 0 : i32
    %c0_i32_2 = arith.constant 0 : i32
    %c0_i32_3 = arith.constant 0 : i32
    return %arg0, %1, %c0_i32, %c0_i32_1, %c0_i32_2 : i32, i32, i32, i32, i32
  }
  func.func @transform_2(%arg0: i32, %arg1: i32) -> (i32, i32, i32, i32, i32) {
    %c1_i32 = arith.constant 1 : i32
    %0 = arith.muli %arg1, %c1_i32 : i32
    %c2_i32 = arith.constant 2 : i32
    %1 = arith.addi %0, %c2_i32 : i32
    %c0_i32 = arith.constant 0 : i32
    %c0_i32_0 = arith.constant 0 : i32
    %c0_i32_1 = arith.constant 0 : i32
    %c0_i32_2 = arith.constant 0 : i32
    return %arg0, %1, %c0_i32, %c0_i32_0, %c0_i32_1 : i32, i32, i32, i32, i32
  }
  func.func @transform_3(%arg0: i32, %arg1: i32) -> (i32, i32, i32) {
    %c0_i32 = arith.constant 0 : i32
    %c0_i32_0 = arith.constant 0 : i32
    %c0_i32_1 = arith.constant 0 : i32
    %c0_i32_2 = arith.constant 0 : i32
    return %c0_i32, %c0_i32_0, %c0_i32_1 : i32, i32, i32
  }
  func.func @transform_4(%arg0: i32, %arg1: i32) -> (i32, i32) {
    %c0_i32 = arith.constant 0 : i32
    %c0_i32_0 = arith.constant 0 : i32
    %c0_i32_1 = arith.constant 0 : i32
    return %c0_i32, %c0_i32_0 : i32, i32
  }
  func.func @transform_5(%arg0: i32, %arg1: i32) -> (i32, i32, i32, i32, i32) {
    %c0_i32 = arith.constant 0 : i32
    %c0_i32_0 = arith.constant 0 : i32
    %c0_i32_1 = arith.constant 0 : i32
    %c0_i32_2 = arith.constant 0 : i32
    return %arg0, %arg1, %c0_i32, %c0_i32_0, %c0_i32_1 : i32, i32, i32, i32, i32
  }
}

</mosaic_0001>

<bundles_post_ra>
// kernel: disconv_forward.1
= control target key start
LH: loop header
LB: loop body
LE: loop exit
PB: predicated region body
PF: predicated region fallthrough
CT: control target
= control target key end

     0   :  { %s2483_s18 = smov 0   ;;  %s2485_s19 = smov 0   ;;  %s2828_s0 = inlined_call_operand.vmem [shape: bf16[2,10,10,10,4], index: 0, kind: input, shape index: {}, may-alias: {0,1,2}]   ;;  %s2829_s1 = inlined_call_operand.vmem [shape: bf16[2,10,10,10,4], index: 1, kind: input, shape index: {}, may-alias: {0,1,2}]   ;;  %s2830_s2 = inlined_call_operand.vmem [shape: bf16[2,10,10,10,4], index: 2, kind: input, shape index: {}, may-alias: {0,1,2}]   ;;  %s2831_s3 = inlined_call_operand.vmem [shape: bf16[27,4,8], index: 3, kind: input, shape index: {}]   ;;  %s2832_s4 = inlined_call_operand.vmem [shape: f32[1,8], index: 4, kind: input, shape index: {}]   ;;  %s2833_s5 = inlined_call_operand.vmem [shape: f32[2,8,8,8,8], index: 5, kind: output, shape index: {}]  }
   0x1   :  { %2834 = sst [smem:[#allocation2_spill]] %s2828_s0  ;;  %s2487_s20 = smov 0  }
   0x2   :  { %s2489_s21 = smov 0   ;;  %s2491_s22 = smov 0  }
   0x3 LB: > { %s24_s23 = sadd.s32 1, %s2437_s20  ;;  %s27_s24 = sadd.s32 1, %s2441_s21  ;;  %s2445_s22 = sphi %s2491_s22, %s15_s22   ;;  %s2441_s21 = sphi %s2489_s21, %s2839_s21   ;;  %s2437_s20 = sphi %s2487_s20, %s2838_s20   ;;  %s2433_s19 = sphi %s2485_s19, %s2837_s19   ;;  %s2429_s18 = sphi %s2483_s18, %s2836_s18  }
   0x4   : > { %p25_p0 = scmp.ge.s32.totalorder %s24_s23, 8  ;;  %p2024_p1 = scmp.ge.s32.totalorder %s2445_s22, 1 }
   0x5   : > { %p247_p2 = scmp.lt.s32.totalorder %s2445_s22, 17 }
   0x6   : > { %s2841_s23 = smov (%p25_p0, %s24_s23), 0  ;;  %s2843_s24 = smov (!%p25_p0, %s27_s24), %s2441_s21 }
   0x7   : > { %p248_p3 = pnand %p2024_p1, %p247_p2  ;;  %p29_p4 = scmp.ge.s32.totalorder %s2843_s24, 2 }
   0x8   : > { %p303_p5 = scmp.lt.s32.totalorder (!%p248_p3), %s2433_s19, 1  ;;  %p305_p6 = scmp.lt.s32.totalorder (!%p248_p3), %s2429_s18, 9 }
   0x9   : > { %s2845_s24 = smov (%p29_p4, %s2843_s24), 0  ;;  %251 = sbr.rel (%p248_p3) target bundleno = 506 (0x1fa), region = 40 }
   0xa   : > { %s312_s27 = sadd.s32 (!%p248_p3), 1, %s2429_s18  ;;  %s323_s6 = sadd.s32 (!%p248_p3), 2, %s2429_s18 }
   0xb   : > { %p315_p7 = scmp.lt.s32.totalorder (!%p248_p3), %s312_s27, 9  ;;  %s2835_s0 = sld [smem:[#allocation2_spill]] (!%p248_p3) }
   0xc   : > { %p326_p8 = scmp.lt.s32.totalorder (!%p248_p3), %s323_s6, 9  ;;  %p336_p9 = scmp.lt.s32.totalorder (!%p248_p3), %s2429_s18, 7 }
   0xe   : > { %v2519_v0 = vld [vmem:[%s2832_s4] ss:$0 sm:$0xff]  ;;  %s2847_s19 = smov (!%p303_p5, %s2433_s19), 1  ;;  %s2849_s27 = smov (!%p315_p7, %s312_s27), 9 }
   0xf   : > { %s306_s28 = scalar_select %p305_p6, %s2429_s18, 9 }
  0x10   : > { %s2339_s29 = smul.u32 200, %s2847_s19  ;;  %s2029_s25 = sshll.u32 %s2847_s19, 6 }
  0x11   : > { %s2338_s30 = smul.u32 20, %s306_s28  ;;  %s2851_s6 = smov (!%p326_p8, %s323_s6), 9 }
  0x12   : > { %s2340_s9 = smul.u32 20, %s2849_s27  ;;  %s2853_s18 = smov (!%p336_p9, %s2429_s18), 7 }
  0x13   : > { %s309_s7 = sadd.s32 %s2339_s29, %s2338_s30  ;;  %s2341_s26 = smul.u32 20, %s2851_s6 }
  0x14   : > { %s2025_s8 = sshll.u32 %s309_s7, 2  ;;  %s319_s13 = sadd.s32 %s2340_s9, %s2339_s29 }
  0x15   : > { %s2527_s12 = scalar_lea.vmem %s2835_s0, %s2025_s8  ;;  %s2026_s14 = sshll.u32 %s319_s13, 2 }
  0x16   : > { %s2533_s17 = scalar_lea.vmem %s2829_s1, %s2026_s14  ;;  %s2028_s28 = sshll.u32 %s2853_s18, 3 }
  0x17   : > { %s330_s27 = sadd.s32 %s2341_s26, %s2339_s29  ;;  %s340_s30 = sadd.s32 %s2029_s25, %s2028_s28 }
  0x18   : > { %s2027_s7 = sshll.u32 %s330_s27, 2  ;;  %s2030_s10 = sshll.u32 %s340_s30, 3 }
  0x19   : > { %s2539_s9 = scalar_lea.vmem %s2830_s2, %s2027_s7  ;;  %s2544_s15 = scalar_lea.vmem %s2833_s5, %s2030_s10 }
  0x1a   : > { %s2546_s14 = smov 0  }
  0x1b LB: >> { %v2033_v1 = vld [vmem:[%s2831_s3 + $0x2] sm:$0x3]  ;;  %vm375_vm0 = vcmask 1041408   ;;  %v356_v2 = vld [vmem:[%s2831_s3] sm:$0x3]  ;;  %v2451_v3 = vmov 0.0   ;;  %s2449_s14 = sphi %s2546_s14, %s350_s14  }
  0x1c   : >> { %2176 = vmatprep.subr.bf16.mxu0 %v2451_v3  ;;  %v377_v4 = vsel %vm375_vm0, %v2033_v1, 0  ;;  %2182 = vmatprep.subr.bf16.mxu1 %v2451_v3  ;;  %v423_v5 = vsel %vm375_vm0, %v356_v2, 0  ;;  %s2562_s0 = sshll.u32 %s2449_s14, 3  ;;  %vm371_vm1 = vcmask 31744   ;;  %v2042_v6 = vld [vmem:[%s2831_s3 + $0x6] sm:$0x3] }
  0x1d   : >> { %2177 = vmatpush3.bf16.msra.mxu0 %v377_v4  ;;  %2183 = vmatpush3.bf16.msra.mxu1 %v423_v5  ;;  %vm2452_vm2 = vmmov 0   ;;  %s353_s26 = scalar_lea.vmem %s2527_s12, %s2562_s0  ;;  %v527_v7 = vsel %vm375_vm0, %v2042_v6, 0  ;;  %v2037_v13 = vld [vmem:[%s2831_s3 + $0x4] sm:$0x3]  ;;  %v2047_v16 = vld [vmem:[%s2831_s3 + $0xa] sm:$0x3]  ;;  %s2630_s16 = scalar_lea.vmem %s2533_s17, %s2562_s0 }
  0x1e   : >> { %2178 = vmatprep.mubr.msk.bf16.mxu0 %vm2452_vm2, %v2451_v3  ;;  %2184 = vmatprep.mubr.msk.bf16.mxu1 %vm2452_vm2, %v2451_v3  ;;  %v354_v8 = vld [vmem:[%s353_s26] sm:$0xf]  ;;  %v355_v9 = vld [vmem:[%s353_s26 + $0x4] sm:$0x1]  ;;  %v2040_v15 = vld [vmem:[%s353_s26 + $0x8] sm:$0xf]  ;;  %s2692_s29 = scalar_lea.vmem %s2539_s9, %s2562_s0  ;;  %s1850_s8 = scalar_lea.vmem %s2544_s15, %s2562_s0 }
  0x1f   : >> { %2188 = vmatprep.subr.bf16.mxu0 %v2451_v3  ;;  %2194 = vmatprep.subr.bf16.mxu1 %v2451_v3  ;;  %v2034_v10 = vcombine.low %v354_v8, %v355_v9  ;;  %v2041_v17 = vld [vmem:[%s353_s26 + $0xc] sm:$0x1]  ;;  %v2050_v18 = vld [vmem:[%s353_s26 + $0x10] sm:$0xf]  ;;  %v2051_v19 = vld [vmem:[%s353_s26 + $0x14] sm:$0x1] }
  0x20   : >> { %2185 = vmatmul.mubr.msk.bf16.vlgmr.msra.gmra.mxu1 %vm371_vm1, %v354_v8  ;;  %v472_v21 = vsel %vm375_vm0, %v2037_v13, 0  ;;  %v638_v22 = vsel %vm375_vm0, %v2047_v16, 0  ;;  %v2045_v23 = vcombine.low %v2040_v15, %v2041_v17  ;;  %v2590_v24 = vcombine.low %v2050_v18, %v2051_v19  ;;  %v2044_v25 = vld [vmem:[%s2831_s3 + $0x8] sm:$0x3]  ;;  %v2054_v29 = vld [vmem:[%s2831_s3 + $0xe] sm:$0x3] }
  0x21   : >> { %2195 = vmatpush3.bf16.msra.mxu1 %v527_v7  ;;  %2196 = vmatprep.mubr.msk.bf16.mxu1 %vm2452_vm2, %v2451_v3  ;;  %v365_v11 = vshrl.u32 %v2034_v10, 16  ;;  %v367_v12 = vshll.u32 %v2034_v10, 16  ;;  %v467_v26 = vrot.slane %v2034_v10, 1  ;;  %v588_v31 = vsel %vm375_vm0, %v2044_v25, 0  ;;  %v2052_v37 = vld [vmem:[%s2831_s3 + $0xc] sm:$0x3] }
  0x22   : >> { %2206 = vmatprep.subr.bf16.mxu1 %v2451_v3  ;;  %v580_v27 = vshll.u32 %v2045_v23, 16  ;;  %v633_v28 = vrot.slane %v2045_v23, 1  ;;  %v746_v30 = vshll.u32 %v2590_v24, 16  ;;  %v754_v32 = vsel %vm375_vm0, %v2054_v29, 0  ;;  %v2060_v40 = vld [vmem:[%s2831_s3 + $0x12] sm:$0x3] }
  0x23   : >> { %v369_v14 = vrot.slane %v367_v12, 1  ;;  %v578_v33 = vshrl.u32 %v2045_v23, 16  ;;  %v744_v35 = vshrl.u32 %v2590_v24, 16  ;;  %v693_v41 = vsel %vm375_vm0, %v2052_v37, 0  ;;  %v2057_v43 = vld [vmem:[%s2831_s3 + $0x10] sm:$0x3] }
  0x24   : >> { %v582_v34 = vrot.slane %v580_v27, 1  ;;  %v748_v36 = vrot.slane %v746_v30, 1  ;;  %v857_v42 = vsel %vm375_vm0, %v2060_v40, 0  ;;  %v849_v44 = vld [vmem:[%s2630_s16] sm:$0xf]  ;;  %v804_v49 = vsel %vm375_vm0, %v2057_v43, 0 }
  0x25   : >> { %v370_v20 = vor.u32 %v369_v14, %v365_v11  ;;  %v2065_v45 = vld [vmem:[%s2831_s3 + $0x16] sm:$0x3]  ;;  %v850_v46 = vld [vmem:[%s2630_s16 + $0x4] sm:$0x1]  ;;  %v2068_v47 = vld [vmem:[%s2630_s16 + $0x8] sm:$0xf] }
  0x26   : >> { %v583_v38 = vor.u32 %v582_v34, %v578_v33  ;;  %v749_v39 = vor.u32 %v748_v36, %v744_v35  ;;  %v2069_v48 = vld [vmem:[%s2630_s16 + $0xc] sm:$0x1]  ;;  %v968_v50 = vsel %vm375_vm0, %v2065_v45, 0  ;;  %v2063_v51 = vcombine.low %v849_v44, %v850_v46  ;;  %v2062_v53 = vld [vmem:[%s2831_s3 + $0x14] sm:$0x3]  ;;  %s350_s14 = sadd.s32 1, %s2449_s14  }
  0x27   : >> { %2179 = vmatmul.mubr.msk.bf16.vlgmr.msra.gmra.mxu0 %vm371_vm1, %v370_v20  ;;  %v2650_v52 = vcombine.low %v2068_v47, %v2069_v48  ;;  %v799_v54 = vrot.slane %v2590_v24, 1  ;;  %v2072_v57 = vld [vmem:[%s2831_s3 + $0x1a] sm:$0x3]  ;;  %v918_v59 = vsel %vm375_vm0, %v2062_v53, 0  ;;  %v2070_v2 = vld [vmem:[%s2831_s3 + $0x18] sm:$0x3] }
  0x28   : >> { %2197 = vmatmul.mubr.msk.bf16.vlgmr.msra.gmra.mxu1 %vm371_vm1, %v2040_v15  ;;  %2189 = vmatpush3.bf16.msra.mxu0 %v472_v21  ;;  %v910_v55 = vshll.u32 %v2063_v51, 16  ;;  %v963_v56 = vrot.slane %v2063_v51, 1  ;;  %v1082_v60 = vsel %vm375_vm0, %v2072_v57, 0  ;;  %v908_v61 = vshrl.u32 %v2063_v51, 16  ;;  %v2080_v6 = vld [vmem:[%s2831_s3 + $0x1e] sm:$0x3] }
  0x29   : >> { %2190 = vmatprep.mubr.msk.bf16.mxu0 %vm2452_vm2, %v2451_v3  ;;  %2200 = vmatprep.subr.bf16.mxu0 %v2451_v3  ;;  %v1074_v58 = vshll.u32 %v2650_v52, 16  ;;  %v1072_v63 = vshrl.u32 %v2650_v52, 16  ;;  %v1021_v7 = vsel %vm375_vm0, %v2070_v2, 0  ;;  %v1185_v8 = vsel %vm375_vm0, %v2080_v6, 0  ;;  %v2075_v9 = vld [vmem:[%s2831_s3 + $0x1c] sm:$0x3] }
  0x2a   : >> { %2207 = vmatpush3.bf16.msra.mxu1 %v638_v22  ;;  %2208 = vmatprep.mubr.msk.bf16.mxu1 %vm2452_vm2, %v2451_v3  ;;  %v912_v62 = vrot.slane %v910_v55, 1  ;;  %v2078_v10 = vld [vmem:[%s2630_s16 + $0x10] sm:$0xf]  ;;  %v2085_v11 = vld [vmem:[%s2831_s3 + $0x22] sm:$0x3]  ;;  %v1132_v15 = vsel %vm375_vm0, %v2075_v9, 0 }
  0x2b   : >> { %2218 = vmatprep.subr.bf16.mxu1 %v2451_v3  ;;  %v1076_v1 = vrot.slane %v1074_v58, 1  ;;  %v2079_v12 = vld [vmem:[%s2630_s16 + $0x14] sm:$0x1]  ;;  %v1341_v13 = vld [vmem:[%s2692_s29] sm:$0xf]  ;;  %v1296_v16 = vsel %vm375_vm0, %v2085_v11, 0 }
  0x2c   : >> { %v913_v4 = vor.u32 %v912_v62, %v908_v61  ;;  %v1342_v14 = vld [vmem:[%s2692_s29 + $0x4] sm:$0x1]  ;;  %v2083_v17 = vcombine.low %v2078_v10, %v2079_v12  ;;  %v2082_v19 = vld [vmem:[%s2831_s3 + $0x20] sm:$0x3]  ;;  %v1127_v20 = vrot.slane %v2650_v52, 1  ;;  %vm1839_vm3 = vcmask 64512  }
  0x2d   : >> { %v1077_v5 = vor.u32 %v1076_v1, %v1072_v63  ;;  %v2090_v23 = vld [vmem:[%s2831_s3 + $0x26] sm:$0x3]  ;;  %v1246_v25 = vsel %vm375_vm0, %v2082_v19, 0  ;;  %v2098_v34 = vld [vmem:[%s2831_s3 + $0x2a] sm:$0x3]  ;;  %p347_p10 = scmp.ge.s32.totalorder %s350_s14, 8  }
  0x2e   : >> { %v1238_v21 = vshll.u32 %v2083_v17, 16  ;;  %v1291_v22 = vrot.slane %v2083_v17, 1  ;;  %v1236_v27 = vshrl.u32 %v2083_v17, 16  ;;  %v1513_v36 = vsel %vm375_vm0, %v2098_v34, 0  ;;  %v2093_v37 = vld [vmem:[%s2831_s3 + $0x28] sm:$0x3] }
  0x2f   : >> { %2191 = vmatmul.mubr.msk.bf16.vlgmr.msra.gmra.mxu0 %vm371_vm1, %v467_v26  ;;  %v1410_v26 = vsel %vm375_vm0, %v2090_v23, 0  ;;  %v2097_v40 = vld [vmem:[%s2692_s29 + $0xc] sm:$0x1]  ;;  %v1460_v43 = vsel %vm375_vm0, %v2093_v37, 0  ;;  %v2110_v51 = vld [vmem:[%s2831_s3 + $0x32] sm:$0x3] }
  0x30   : >> { %2209 = vmatmul.mubr.msk.bf16.vlgmr.msra.gmra.mxu1 %vm371_vm1, %v633_v28  ;;  %2201 = vmatpush3.bf16.msra.mxu0 %v588_v31  ;;  %v1240_v28 = vrot.slane %v1238_v21, 1  ;;  %v2088_v31 = vld [vmem:[%s2831_s3 + $0x24] sm:$0x3]  ;;  %v2113_v63 = vld [vmem:[%s2831_s3 + $0x34] sm:$0x3] }
  0x31   : >> { %2202 = vmatprep.mubr.msk.bf16.mxu0 %vm2452_vm2, %v2451_v3  ;;  %2212 = vmatprep.subr.bf16.mxu0 %v2451_v3  ;;  %v1349_v35 = vsel %vm375_vm0, %v2088_v31, 0  ;;  %v1788_v1 = vsel %vm375_vm0, %v2113_v63, 0 }
  0x32   : >> { %2219 = vmatpush3.bf16.msra.mxu1 %v754_v32  ;;  %2220 = vmatprep.mubr.msk.bf16.mxu1 %vm2452_vm2, %v2451_v3  ;;  %v1241_v32 = vor.u32 %v1240_v28, %v1236_v27 }
  0x33   : >> { %2230 = vmatprep.subr.bf16.mxu1 %v2451_v3 }
  0x37   : >> { %2203 = vmatmul.mubr.msk.bf16.vlgmr.msra.gmra.mxu0 %vm371_vm1, %v583_v38  ;;  %v2096_v38 = vld [vmem:[%s2692_s29 + $0x8] sm:$0xf] }
  0x38   : >> { %2221 = vmatmul.mubr.msk.bf16.vlgmr.msra.gmra.mxu1 %vm371_vm1, %v749_v39  ;;  %2213 = vmatpush3.bf16.msra.mxu0 %v693_v41  ;;  %v2103_v39 = vld [vmem:[%s2831_s3 + $0x2e] sm:$0x3]  ;;  %v2106_v41 = vld [vmem:[%s2692_s29 + $0x10] sm:$0xf]  ;;  %v2101_v45 = vcombine.low %v2096_v38, %v2097_v40 }
  0x39   : >> { %2214 = vmatprep.mubr.msk.bf16.mxu0 %vm2452_vm2, %v2451_v3  ;;  %2224 = vmatprep.subr.bf16.mxu0 %v2451_v3 }
  0x3a   : >> { %2231 = vmatpush3.bf16.msra.mxu1 %v857_v42  ;;  %2232 = vmatprep.mubr.msk.bf16.mxu1 %vm2452_vm2, %v2451_v3  ;;  %v2107_v42 = vld [vmem:[%s2692_s29 + $0x14] sm:$0x1]  ;;  %v1564_v55 = vshrl.u32 %v2101_v45, 16 }
  0x3b   : >> { %2242 = vmatprep.subr.bf16.mxu1 %v2451_v3  ;;  %v2111_v46 = vcombine.low %v2106_v41, %v2107_v42 }
  0x3d   : >> { %v1730_v52 = vshll.u32 %v2111_v46, 16  ;;  %v1728_v57 = vshrl.u32 %v2111_v46, 16  ;;  %v1783_v2 = vrot.slane %v2111_v46, 1 }
  0x3f   : >> { %2215 = vmatmul.mubr.msk.bf16.vlgmr.msra.gmra.mxu0 %vm371_vm1, %v2050_v18  ;;  %v2711_v18 = vcombine.low %v1341_v13, %v1342_v14  ;;  %v1732_v58 = vrot.slane %v1730_v52, 1 }
  0x40   : >> { %2233 = vmatmul.mubr.msk.bf16.vlgmr.msra.gmra.mxu1 %vm371_vm1, %v849_v44  ;;  %2225 = vmatpush3.bf16.msra.mxu0 %v804_v49  ;;  %v1624_v44 = vsel %vm375_vm0, %v2103_v39, 0  ;;  %v1566_v49 = vshll.u32 %v2101_v45, 16 }
  0x41   : >> { %2226 = vmatprep.mubr.msk.bf16.mxu0 %vm2452_vm2, %v2451_v3  ;;  %2236 = vmatprep.subr.bf16.mxu0 %v2451_v3  ;;  %v1402_v24 = vshll.u32 %v2711_v18, 16  ;;  %v1400_v29 = vshrl.u32 %v2711_v18, 16  ;;  %v1455_v48 = vrot.slane %v2711_v18, 1  ;;  %v1733_v61 = vor.u32 %v1732_v58, %v1728_v57 }
  0x42   : >> { %2243 = vmatpush3.bf16.msra.mxu1 %v968_v50  ;;  %2244 = vmatprep.mubr.msk.bf16.mxu1 %vm2452_vm2, %v2451_v3  ;;  %v1619_v50 = vrot.slane %v2101_v45, 1 }
  0x43   : >> { %2254 = vmatprep.subr.bf16.mxu1 %v2451_v3  ;;  %v1404_v30 = vrot.slane %v1402_v24, 1 }
  0x45   : >> { %v1405_v33 = vor.u32 %v1404_v30, %v1400_v29 }
  0x47   : >> { %2227 = vmatmul.mubr.msk.bf16.vlgmr.msra.gmra.mxu0 %vm371_vm1, %v799_v54  ;;  %v1738_v54 = vsel %vm375_vm0, %v2110_v51, 0 }
  0x48   : >> { %2245 = vmatmul.mubr.msk.bf16.vlgmr.msra.gmra.mxu1 %vm371_vm1, %v963_v56  ;;  %2237 = vmatpush3.bf16.msra.mxu0 %v918_v59  ;;  %v1568_v56 = vrot.slane %v1566_v49, 1  ;;  %v2108_v59 = vld [vmem:[%s2831_s3 + $0x30] sm:$0x3] }
  0x49   : >> { %2238 = vmatprep.mubr.msk.bf16.mxu0 %vm2452_vm2, %v2451_v3  ;;  %2248 = vmatprep.subr.bf16.mxu0 %v2451_v3  ;;  %v1677_v62 = vsel %vm375_vm0, %v2108_v59, 0 }
  0x4a   : >> { %2255 = vmatpush3.bf16.msra.mxu1 %v1082_v60  ;;  %2256 = vmatprep.mubr.msk.bf16.mxu1 %vm2452_vm2, %v2451_v3  ;;  %v1569_v60 = vor.u32 %v1568_v56, %v1564_v55 }
  0x4b   : >> { %2266 = vmatprep.subr.bf16.mxu1 %v2451_v3 }
  0x4f   : >> { %2239 = vmatmul.mubr.msk.bf16.vlgmr.msra.gmra.mxu0 %vm371_vm1, %v913_v4 }
  0x50   : >> { %2257 = vmatmul.mubr.msk.bf16.vlgmr.msra.gmra.mxu1 %vm371_vm1, %v1077_v5  ;;  %2249 = vmatpush3.bf16.msra.mxu0 %v1021_v7 }
  0x51   : >> { %2250 = vmatprep.mubr.msk.bf16.mxu0 %vm2452_vm2, %v2451_v3  ;;  %2260 = vmatprep.subr.bf16.mxu0 %v2451_v3 }
  0x52   : >> { %2267 = vmatpush3.bf16.msra.mxu1 %v1185_v8  ;;  %2268 = vmatprep.mubr.msk.bf16.mxu1 %vm2452_vm2, %v2451_v3 }
  0x53   : >> { %2278 = vmatprep.subr.bf16.mxu1 %v2451_v3 }
  0x57   : >> { %2251 = vmatmul.mubr.msk.bf16.vlgmr.msra.gmra.mxu0 %vm371_vm1, %v2068_v47  ;;  %v2100_v47 = vld [vmem:[%s2831_s3 + $0x2c] sm:$0x3] }
  0x58   : >> { %2269 = vmatmul.mubr.msk.bf16.vlgmr.msra.gmra.mxu1 %vm371_vm1, %v2078_v10  ;;  %2261 = vmatpush3.bf16.msra.mxu0 %v1132_v15  ;;  %v1574_v53 = vsel %vm375_vm0, %v2100_v47, 0 }
  0x59   : >> { %2262 = vmatprep.mubr.msk.bf16.mxu0 %vm2452_vm2, %v2451_v3  ;;  %2272 = vmatprep.subr.bf16.mxu0 %v2451_v3 }
  0x5a   : >> { %2279 = vmatpush3.bf16.msra.mxu1 %v1296_v16  ;;  %2280 = vmatprep.mubr.msk.bf16.mxu1 %vm2452_vm2, %v2451_v3 }
  0x5b   : >> { %2290 = vmatprep.subr.bf16.mxu1 %v2451_v3 }
  0x5f   : >> { %2263 = vmatmul.mubr.msk.bf16.vlgmr.msra.gmra.mxu0 %vm371_vm1, %v1127_v20 }
  0x60   : >> { %2281 = vmatmul.mubr.msk.bf16.vlgmr.msra.gmra.mxu1 %vm371_vm1, %v1291_v22  ;;  %2273 = vmatpush3.bf16.msra.mxu0 %v1246_v25 }
  0x61   : >> { %2274 = vmatprep.mubr.msk.bf16.mxu0 %vm2452_vm2, %v2451_v3  ;;  %2284 = vmatprep.subr.bf16.mxu0 %v2451_v3 }
  0x62   : >> { %2291 = vmatpush3.bf16.msra.mxu1 %v1410_v26  ;;  %2292 = vmatprep.mubr.msk.bf16.mxu1 %vm2452_vm2, %v2451_v3 }
  0x63   : >> { %2302 = vmatprep.subr.bf16.mxu1 %v2451_v3 }
  0x67   : >> { %2275 = vmatmul.mubr.msk.bf16.vlgmr.msra.gmra.mxu0 %vm371_vm1, %v1241_v32 }
  0x68   : >> { %2293 = vmatmul.mubr.msk.bf16.vlgmr.msra.gmra.mxu1 %vm371_vm1, %v1405_v33  ;;  %2285 = vmatpush3.bf16.msra.mxu0 %v1349_v35 }
  0x69   : >> { %2286 = vmatprep.mubr.msk.bf16.mxu0 %vm2452_vm2, %v2451_v3  ;;  %2296 = vmatprep.subr.bf16.mxu0 %v2451_v3 }
  0x6a   : >> { %2303 = vmatpush3.bf16.msra.mxu1 %v1513_v36  ;;  %2304 = vmatprep.mubr.msk.bf16.mxu1 %vm2452_vm2, %v2451_v3 }
  0x6b   : >> { %2314 = vmatprep.subr.bf16.mxu1 %v2451_v3 }
  0x6f   : >> { %2287 = vmatmul.mubr.msk.bf16.vlgmr.msra.gmra.mxu0 %vm371_vm1, %v1341_v13 }
  0x70   : >> { %2305 = vmatmul.mubr.msk.bf16.vlgmr.msra.gmra.mxu1 %vm371_vm1, %v2096_v38  ;;  %2297 = vmatpush3.bf16.msra.mxu0 %v1460_v43 }
  0x71   : >> { %2298 = vmatprep.mubr.msk.bf16.mxu0 %vm2452_vm2, %v2451_v3  ;;  %2308 = vmatprep.subr.bf16.mxu0 %v2451_v3 }
  0x72   : >> { %2315 = vmatpush3.bf16.msra.mxu1 %v1624_v44  ;;  %2316 = vmatprep.mubr.msk.bf16.mxu1 %vm2452_vm2, %v2451_v3 }
  0x73   : >> { %2326 = vmatprep.subr.bf16.mxu1 %v2451_v3 }
  0x77   : >> { %2299 = vmatmul.mubr.msk.bf16.vlgmr.msra.gmra.mxu0 %vm371_vm1, %v1455_v48 }
  0x78   : >> { %2317 = vmatmul.mubr.msk.bf16.vlgmr.msra.gmra.mxu1 %vm371_vm1, %v1619_v50  ;;  %2309 = vmatpush3.bf16.msra.mxu0 %v1574_v53 }
  0x79   : >> { %2310 = vmatprep.mubr.msk.bf16.mxu0 %vm2452_vm2, %v2451_v3  ;;  %2320 = vmatprep.subr.bf16.mxu0 %v2451_v3 }
  0x7a   : >> { %2327 = vmatpush3.bf16.msra.mxu1 %v1738_v54  ;;  %2328 = vmatprep.mubr.msk.bf16.mxu1 %vm2452_vm2, %v2451_v3 }
  0x7f   : >> { %2311 = vmatmul.mubr.msk.bf16.vlgmr.msra.gmra.mxu0 %vm371_vm1, %v1569_v60 }
  0x80   : >> { %2329 = vmatmul.mubr.msk.bf16.vlgmr.msra.gmra.mxu1 %vm371_vm1, %v1733_v61  ;;  %2321 = vmatpush3.bf16.msra.mxu0 %v1677_v62 }
  0x81   : >> { %2322 = vmatprep.mubr.msk.bf16.mxu0 %vm2452_vm2, %v2451_v3  ;;  %2332 = vmatprep.subr.bf16.mxu0 %v2451_v3 }
  0x87   : >> { %2323 = vmatmul.mubr.msk.bf16.vlgmr.msra.gmra.mxu0 %vm371_vm1, %v2106_v41 }
  0x88   : >> { %2333 = vmatpush3.bf16.msra.mxu0 %v1788_v1  ;;  %2334 = vmatprep.mubr.msk.bf16.mxu0 %vm2452_vm2, %v2451_v3 }
  0x8f   : >> { %2335 = vmatmul.mubr.msk.bf16.vlgmr.msra.gmra.mxu0 %vm371_vm1, %v1783_v2 }
  0xe0   : >> { %v459_v4 = vpop.f32.mrf.mxu1 }
  0xe2   : >> { %v2186_v5 = vpop.f32.mrf.mxu1 }
  0xe4   : >> { %v462_v6 = vpop.f32.mrf.mxu1 }
  0xe6   : >> { %v2187_v7 = vpop.f32.mrf.mxu1 }
  0xe7   : >> { %v413_v8 = vpop.f32.mrf.mxu0 }
  0xe8   : >> { %v563_v9 = vpop.f32.mrf.mxu1  ;;  %v460_v39 = vadd.f32 %v459_v4, %v413_v8 }
  0xe9   : >> { %v2180_v10 = vpop.f32.mrf.mxu0 }
  0xea   : >> { %v2198_v11 = vpop.f32.mrf.mxu1 }
  0xeb   : >> { %v416_v12 = vpop.f32.mrf.mxu0 }
  0xec   : >> { %v566_v13 = vpop.f32.mrf.mxu1 }
  0xed   : >> { %v2181_v14 = vpop.f32.mrf.mxu0 }
  0xee   : >> { %v2199_v15 = vpop.f32.mrf.mxu1 }
  0xef   : >> { %v508_v16 = vpop.f32.mrf.mxu0 }
  0xf0   : >> { %v674_v17 = vpop.f32.mrf.mxu1  ;;  %v514_v42 = vadd.f32 %v508_v16, %v460_v39 }
  0xf1   : >> { %v2192_v18 = vpop.f32.mrf.mxu0 }
  0xf2   : >> { %v2210_v19 = vpop.f32.mrf.mxu1  ;;  %v569_v47 = vadd.f32 %v563_v9, %v514_v42 }
  0xf3   : >> { %v511_v3 = vpop.f32.mrf.mxu0 }
  0xf4   : >> { %v677_v20 = vpop.f32.mrf.mxu1 }
  0xf5   : >> { %v2193_v21 = vpop.f32.mrf.mxu0 }
  0xf6   : >> { %v2211_v22 = vpop.f32.mrf.mxu1 }
  0xf7   : >> { %v624_v23 = vpop.f32.mrf.mxu0 }
  0xf8   : >> { %v790_v24 = vpop.f32.mrf.mxu1  ;;  %v630_v50 = vadd.f32 %v624_v23, %v569_v47 }
  0xf9   : >> { %v2204_v25 = vpop.f32.mrf.mxu0 }
  0xfa   : >> { %v2222_v26 = vpop.f32.mrf.mxu1  ;;  %v680_v55 = vadd.f32 %v674_v17, %v630_v50 }
  0xfb   : >> { %v627_v27 = vpop.f32.mrf.mxu0 }
  0xfc   : >> { %v793_v28 = vpop.f32.mrf.mxu1 }
  0xfd   : >> { %v2205_v29 = vpop.f32.mrf.mxu0 }
  0xfe   : >> { %v2223_v30 = vpop.f32.mrf.mxu1 }
  0xff   : >> { %v729_v31 = vpop.f32.mrf.mxu0 }
 0x100   : >> { %v893_v32 = vpop.f32.mrf.mxu1  ;;  %v735_v58 = vadd.f32 %v729_v31, %v680_v55 }
 0x101   : >> { %v2216_v33 = vpop.f32.mrf.mxu0 }
 0x102   : >> { %v2234_v34 = vpop.f32.mrf.mxu1  ;;  %v796_v63 = vadd.f32 %v790_v24, %v735_v58 }
 0x103   : >> { %v732_v35 = vpop.f32.mrf.mxu0 }
 0x104   : >> { %v896_v36 = vpop.f32.mrf.mxu1 }
 0x105   : >> { %v2217_v37 = vpop.f32.mrf.mxu0 }
 0x106   : >> { %v2235_v38 = vpop.f32.mrf.mxu1 }
 0x107   : >> { %v840_v40 = vpop.f32.mrf.mxu0 }
 0x108   : >> { %v1004_v41 = vpop.f32.mrf.mxu1  ;;  %v846_v4 = vadd.f32 %v840_v40, %v796_v63 }
 0x109   : >> { %v2228_v43 = vpop.f32.mrf.mxu0 }
 0x10a   : >> { %v2246_v44 = vpop.f32.mrf.mxu1  ;;  %v899_v9 = vadd.f32 %v893_v32, %v846_v4 }
 0x10b   : >> { %v843_v45 = vpop.f32.mrf.mxu0 }
 0x10c   : >> { %v1007_v46 = vpop.f32.mrf.mxu1 }
 0x10d   : >> { %v2229_v48 = vpop.f32.mrf.mxu0 }
 0x10e   : >> { %v2247_v49 = vpop.f32.mrf.mxu1 }
 0x10f   : >> { %v954_v51 = vpop.f32.mrf.mxu0 }
 0x110   : >> { %v1118_v52 = vpop.f32.mrf.mxu1  ;;  %v960_v12 = vadd.f32 %v954_v51, %v899_v9 }
 0x111   : >> { %v2240_v53 = vpop.f32.mrf.mxu0 }
 0x112   : >> { %v2258_v54 = vpop.f32.mrf.mxu1  ;;  %v1010_v17 = vadd.f32 %v1004_v41, %v960_v12 }
 0x113   : >> { %v957_v56 = vpop.f32.mrf.mxu0 }
 0x114   : >> { %v1121_v57 = vpop.f32.mrf.mxu1 }
 0x115   : >> { %v2241_v59 = vpop.f32.mrf.mxu0 }
 0x116   : >> { %v2259_v60 = vpop.f32.mrf.mxu1 }
 0x117   : >> { %v1057_v61 = vpop.f32.mrf.mxu0 }
 0x118   : >> { %v1221_v62 = vpop.f32.mrf.mxu1  ;;  %v1063_v3 = vadd.f32 %v1057_v61, %v1010_v17 }
 0x119   : >> { %v2252_v1 = vpop.f32.mrf.mxu0 }
 0x11a   : >> { %v2270_v2 = vpop.f32.mrf.mxu1  ;;  %v1124_v24 = vadd.f32 %v1118_v52, %v1063_v3 }
 0x11b   : >> { %v1060_v5 = vpop.f32.mrf.mxu0 }
 0x11c   : >> { %v1224_v6 = vpop.f32.mrf.mxu1 }
 0x11d   : >> { %v2253_v7 = vpop.f32.mrf.mxu0 }
 0x11e   : >> { %v2271_v8 = vpop.f32.mrf.mxu1 }
 0x11f   : >> { %v1168_v10 = vpop.f32.mrf.mxu0 }
 0x120   : >> { %v1332_v11 = vpop.f32.mrf.mxu1  ;;  %v1174_v27 = vadd.f32 %v1168_v10, %v1124_v24 }
 0x121   : >> { %v2264_v13 = vpop.f32.mrf.mxu0 }
 0x122   : >> { %v2282_v14 = vpop.f32.mrf.mxu1  ;;  %v1227_v32 = vadd.f32 %v1221_v62, %v1174_v27 }
 0x123   : >> { %v1171_v15 = vpop.f32.mrf.mxu0 }
 0x124   : >> { %v1335_v16 = vpop.f32.mrf.mxu1 }
 0x125   : >> { %v2265_v18 = vpop.f32.mrf.mxu0 }
 0x126   : >> { %v2283_v19 = vpop.f32.mrf.mxu1 }
 0x127   : >> { %v1282_v20 = vpop.f32.mrf.mxu0 }
 0x128   : >> { %v1446_v21 = vpop.f32.mrf.mxu1  ;;  %v1288_v35 = vadd.f32 %v1282_v20, %v1227_v32 }
 0x129   : >> { %v2276_v22 = vpop.f32.mrf.mxu0 }
 0x12a   : >> { %v2294_v23 = vpop.f32.mrf.mxu1  ;;  %v1338_v40 = vadd.f32 %v1332_v11, %v1288_v35 }
 0x12b   : >> { %v1285_v25 = vpop.f32.mrf.mxu0 }
 0x12c   : >> { %v1449_v26 = vpop.f32.mrf.mxu1 }
 0x12d   : >> { %v2277_v28 = vpop.f32.mrf.mxu0 }
 0x12e   : >> { %v2295_v29 = vpop.f32.mrf.mxu1 }
 0x12f   : >> { %v1385_v30 = vpop.f32.mrf.mxu0 }
 0x130   : >> { %v1549_v31 = vpop.f32.mrf.mxu1  ;;  %v1391_v43 = vadd.f32 %v1385_v30, %v1338_v40 }
 0x131   : >> { %v2288_v33 = vpop.f32.mrf.mxu0 }
 0x132   : >> { %v2306_v34 = vpop.f32.mrf.mxu1  ;;  %v1452_v48 = vadd.f32 %v1446_v21, %v1391_v43 }
 0x133   : >> { %v1388_v36 = vpop.f32.mrf.mxu0 }
 0x134   : >> { %v1552_v37 = vpop.f32.mrf.mxu1 }
 0x135   : >> { %v2289_v38 = vpop.f32.mrf.mxu0 }
 0x136   : >> { %v2307_v39 = vpop.f32.mrf.mxu1 }
 0x137   : >> { %v1496_v41 = vpop.f32.mrf.mxu0 }
 0x138   : >> { %v1660_v42 = vpop.f32.mrf.mxu1  ;;  %v1502_v51 = vadd.f32 %v1496_v41, %v1452_v48 }
 0x139   : >> { %v2300_v44 = vpop.f32.mrf.mxu0 }
 0x13a   : >> { %v2318_v45 = vpop.f32.mrf.mxu1  ;;  %v1555_v56 = vadd.f32 %v1549_v31, %v1502_v51 }
 0x13b   : >> { %v1499_v46 = vpop.f32.mrf.mxu0 }
 0x13c   : >> { %v1663_v47 = vpop.f32.mrf.mxu1 }
 0x13d   : >> { %v2301_v49 = vpop.f32.mrf.mxu0 }
 0x13e   : >> { %v2319_v50 = vpop.f32.mrf.mxu1 }
 0x13f   : >> { %v1610_v52 = vpop.f32.mrf.mxu0 }
 0x140   : >> { %v1774_v53 = vpop.f32.mrf.mxu1  ;;  %v1616_v59 = vadd.f32 %v1610_v52, %v1555_v56 }
 0x141   : >> { %v2312_v54 = vpop.f32.mrf.mxu0 }
 0x142   : >> { %v2330_v55 = vpop.f32.mrf.mxu1  ;;  %v1666_v63 = vadd.f32 %v1660_v42, %v1616_v59 }
 0x143   : >> { %v1613_v57 = vpop.f32.mrf.mxu0 }
 0x144   : >> { %v1777_v58 = vpop.f32.mrf.mxu1 }
 0x145   : >> { %v2313_v60 = vpop.f32.mrf.mxu0 }
 0x146   : >> { %v2331_v61 = vpop.f32.mrf.mxu1 }
 0x147   : >> { %v1713_v62 = vpop.f32.mrf.mxu0 }
 0x148   : >> { %v1719_v2 = vadd.f32 %v1713_v62, %v1666_v63 }
 0x149   : >> { %v2324_v1 = vpop.f32.mrf.mxu0 }
 0x14a   : >> { %v1780_v6 = vadd.f32 %v1774_v53, %v1719_v2 }
 0x14b   : >> { %v1716_v4 = vpop.f32.mrf.mxu0 }
 0x14d   : >> { %v2325_v5 = vpop.f32.mrf.mxu0 }
 0x14f   : >> { %v1824_v7 = vpop.f32.mrf.mxu0 }
 0x150   : >> { %v1830_v8 = vadd.f32 %v1824_v7, %v1780_v6 }
 0x151   : >> { %v2336_v9 = vpop.f32.mrf.mxu0 }
 0x152   : >> { %v1837_v10 = vadd.f32 %v2519_v0, %v1830_v8 }
 0x153   : >> { %v1827_v11 = vpop.f32.mrf.mxu0 }
 0x154   : >> { %v1838_v12 = vmul.f32 %v1837_v10, %v1837_v10 }
 0x155   : >> { %v2337_v13 = vpop.f32.mrf.mxu0 }
 0x156   : >> { %v1840_v14 = vsel %vm1839_vm3, %v1838_v12, 0.0 }
 0x157   : >> { %1841 = vadd.xlane.f32.xlu0 %v1840_v14 }
 0x1e0   : >> { %v1842_v15 = vpop.xlane.xlu0 %1841 }
 0x1e1   : >> { %v1843_v16 = vmul.f32 0.125, %v1842_v15 }
 0x1e3   : >> { %v1844_v17 = vadd.f32 1e-08, %v1843_v16 }
 0x1e5   : >> { %2401 = vrsqrt.f32 %v1844_v17 }
 0x1f2   : >> { %v2402_v18 = vpop.eup %2401 }
 0x1f3   : >> { %v1846_v19 = vmul.f32 %v2402_v18, %v1837_v10 }
 0x1f5   : >> { %v1847_v3 = vmul.f32 0.2, %v1846_v19  ;;  %349 = sbr.rel (!%p347_p10) target bundleno = 27 (0x1b), region = 119 }
 0x1f7   : >> { %v1848_v20 = vmax.f32 %v1846_v19, %v1847_v3 }
 0x1f9   : >> { %1851 = vst.msk [vmem:[%s1850_s8] sm:$0xff] %vm1839_vm3, %v1848_v20 }
 0x1fa PF: > { %s15_s22 = sadd.s32 1, %s2445_s22   ;;  %s2836_s18 = smov %s2437_s20 }
 0x1fb   : > { %p12_p11 = scmp.ge.s32.totalorder %s15_s22, 18   ;;  %s2837_s19 = smov %s2441_s21 }
 0x1fc   : > { %s2838_s20 = smov %s2841_s23  ;;  %s2839_s21 = smov %s2845_s24 }
 0x1fd   :  { %14 = sbr.rel (!%p12_p11) target bundleno = 3 (0x3), region = 130 }

</bundles_post_ra>
